<compile_context>
chip_gen: v5e
topology: v5e:2x2
jax: 0.10.0
libtpu: 0.0.40
codegen_flags: <defaults>
</compile_context>

<pallas_src>
import jax
import jax.numpy as jnp
from jax.experimental import pallas as pl
from jax.experimental.pallas import tpu as pltpu


def _round_up(x, m):
    return ((x + m - 1) // m) * m


def _cdiv(a, b):
    return (a + b - 1) // b


def qnet_kernel(x_ref, w1_ref, b1_ref, w2_ref, b2_ref, o_ref):
    # fc1: f32 MXU matmul with f32 accumulation, bias + ReLU on the VPU.
    x = x_ref[...].astype(jnp.float32)
    h = jnp.dot(x, w1_ref[...], preferred_element_type=jnp.float32)
    h = jnp.maximum(h + b1_ref[...], 0.0)

    # fc2 (unpadded: C columns only).
    logits = jnp.dot(h, w2_ref[...], preferred_element_type=jnp.float32)
    logits = logits + b2_ref[...]

    # Numerically stable row-wise softmax (row-local, so ragged/garbage rows
    # in a partial last block cannot contaminate valid rows).
    m = jnp.max(logits, axis=1, keepdims=True)
    e = jnp.exp(logits - m)
    denom = jnp.sum(e, axis=1, keepdims=True)
    o_ref[...] = (e * pl.reciprocal(denom, approx=False)).astype(o_ref.dtype)


def qnetwork_forward(state, w1, b1, w2, b2, *, block_b=4096, out_dtype=jnp.bfloat16):
    """state: [B, D], w1: [D, H], b1: [1, H] (or [H]), w2: [H, C], b2: [1, C] (or [C])."""
    B, D = state.shape
    H = w1.shape[1]
    C = w2.shape[1]
    b1 = b1.reshape(1, H)
    b2 = b2.reshape(1, C)
    assert w1.shape == (D, H) and w2.shape == (H, C)

    # Batch tile: multiple of 8 sublanes, capped at block_b, and clamped so we
    # get >= 2 grid blocks whenever B > 8 (keeps both v7x TCs busy; no cost on
    # single-TC v5e/v6e). No input padding: Pallas masks the ragged last block.
    half = _round_up(_cdiv(B, 2), 8)
    TB = max(8, min(_round_up(block_b, 8), half))
    num_blocks = _cdiv(B, TB)

    out_itemsize = jnp.dtype(out_dtype).itemsize
    cost = pl.CostEstimate(
        flops=2 * B * (D * H + H * C),
        transcendentals=B * C,
        bytes_accessed=(B * D * state.dtype.itemsize     # state read
                        + B * C * out_itemsize           # output write (unpadded)
                        + (D * H + H + H * C + C) * 4),  # resident params
    )

    out = pl.pallas_call(
        qnet_kernel,
        out_shape=jax.ShapeDtypeStruct((B, C), out_dtype),
        grid=(num_blocks,),
        in_specs=[
            pl.BlockSpec((TB, D), lambda i: (i, 0)),   # state tile (pipelined)
            pl.BlockSpec((D, H), lambda i: (0, 0)),    # fc1 weight (VMEM-resident)
            pl.BlockSpec((1, H), lambda i: (0, 0)),    # fc1 bias   (VMEM-resident)
            pl.BlockSpec((H, C), lambda i: (0, 0)),    # fc2 weight (VMEM-resident)
            pl.BlockSpec((1, C), lambda i: (0, 0)),    # fc2 bias   (VMEM-resident)
        ],
        out_specs=pl.BlockSpec((TB, C), lambda i: (i, 0)),
        compiler_params=pltpu.CompilerParams(
            dimension_semantics=("parallel",),         # 2-TC sharding on v7x
        ),
        cost_estimate=cost,
    )(state, w1, b1, w2, b2)

    return out


def init_params(key, input_dim, hidden, num_classifiers):
    # Deterministic init mimicking PyTorch Linear default: U(-1/sqrt(fan_in), 1/sqrt(fan_in))
    k1, k2, k3, k4 = jax.random.split(key, 4)
    bound1 = 1.0 / (input_dim ** 0.5)
    bound2 = 1.0 / (hidden ** 0.5)
    w1 = jax.random.uniform(k1, (input_dim, hidden), jnp.float32, -bound1, bound1)
    b1 = jax.random.uniform(k2, (1, hidden), jnp.float32, -bound1, bound1)
    w2 = jax.random.uniform(k3, (hidden, num_classifiers), jnp.float32, -bound2, bound2)
    b2 = jax.random.uniform(k4, (1, num_classifiers), jnp.float32, -bound2, bound2)
    return w1, b1, w2, b2


def qnetwork_reference(state, w1, b1, w2, b2):
    h = jnp.maximum(state @ w1 + b1, 0.0)
    logits = h @ w2 + b2
    return jax.nn.softmax(logits, axis=1)


if __name__ == "__main__":
    key = jax.random.PRNGKey(0)
    input_dim = 16       # X_train.shape[1]
    hidden = 32          # fc1 output size (fixed in module)
    num_classifiers = 4  # fc2 output size

    k_state, k_state2, k_params = jax.random.split(key, 3)
    w1, b1, w2, b2 = init_params(k_params, input_dim, hidden, num_classifiers)

    # Case 1: small aligned batch (single grid block).
    batch = 8
    state = jax.random.normal(k_state, (batch, input_dim), dtype=jnp.float32)
    out = jax.block_until_ready(qnetwork_forward(state, w1, b1, w2, b2))
    assert out.shape == (batch, num_classifiers)
    ref = qnetwork_reference(state, w1, b1, w2, b2)
    assert bool(jnp.allclose(jnp.sum(out.astype(jnp.float32), axis=1), 1.0, atol=2e-2))
    assert bool(jnp.allclose(out.astype(jnp.float32), ref, atol=2e-2, rtol=2e-2))

    # Case 2: ragged batch (two grid blocks, masked partial last block).
    batch2 = 20
    state2 = jax.random.normal(k_state2, (batch2, input_dim), dtype=jnp.float32)
    out2 = jax.block_until_ready(qnetwork_forward(state2, w1, b1, w2, b2))
    assert out2.shape == (batch2, num_classifiers)
    ref2 = qnetwork_reference(state2, w1, b1, w2, b2)
    assert bool(jnp.allclose(out2.astype(jnp.float32), ref2, atol=2e-2, rtol=2e-2))

    print("KERNEL_OK")
</pallas_src>

<mosaic_0001>
module attributes {stable_mosaic.version = 11 : i64} {
  func.func @qnet_kernel(%arg0: i32, %arg1: memref<8x16xf32, #tpu.memory_space<vmem>>, %arg2: memref<16x32xf32, #tpu.memory_space<vmem>>, %arg3: memref<1x32xf32, #tpu.memory_space<vmem>>, %arg4: memref<32x4xf32, #tpu.memory_space<vmem>>, %arg5: memref<1x4xf32, #tpu.memory_space<vmem>>, %arg6: memref<8x4xbf16, #tpu.memory_space<vmem>>) attributes {dimension_semantics = [#tpu.dimension_semantics<parallel>], iteration_bounds = array<i64: 1>, scalar_prefetch = 0 : i64, scratch_operands = 0 : i64, tpu.core_type = #tpu.core_type<tc>, window_params = [{transform_indices = @transform_0, window_bounds = array<i64: 8, 16>}, {pipeline_mode = #tpu.pipeline_mode<synchronous>, transform_indices = @transform_1, window_bounds = array<i64: 16, 32>}, {pipeline_mode = #tpu.pipeline_mode<synchronous>, transform_indices = @transform_2, window_bounds = array<i64: 1, 32>}, {pipeline_mode = #tpu.pipeline_mode<synchronous>, transform_indices = @transform_3, window_bounds = array<i64: 32, 4>}, {pipeline_mode = #tpu.pipeline_mode<synchronous>, transform_indices = @transform_4, window_bounds = array<i64: 1, 4>}, {transform_indices = @transform_5, window_bounds = array<i64: 8, 4>}]} {
    %c0 = arith.constant 0 : index
    %c0_0 = arith.constant 0 : index
    %0 = vector.load %arg1[%c0, %c0_0] : memref<8x16xf32, #tpu.memory_space<vmem>>, vector<8x16xf32>
    %c0_1 = arith.constant 0 : index
    %c0_2 = arith.constant 0 : index
    %1 = vector.load %arg2[%c0_1, %c0_2] : memref<16x32xf32, #tpu.memory_space<vmem>>, vector<16x32xf32>
    %cst = arith.constant dense<0.000000e+00> : vector<8x32xf32>
    %2 = tpu.matmul %0, %1, %cst {dimension_numbers = #tpu.dot_dimension_numbers<[1], [0], [0], [1], [0, 0, 1, 1], [], []>} : vector<8x16xf32>, vector<16x32xf32>, vector<8x32xf32> -> vector<8x32xf32>
    %c0_3 = arith.constant 0 : index
    %c0_4 = arith.constant 0 : index
    %3 = vector.load %arg3[%c0_3, %c0_4] : memref<1x32xf32, #tpu.memory_space<vmem>>, vector<1x32xf32>
    %4 = vector.broadcast %3 : vector<1x32xf32> to vector<8x32xf32>
    %5 = arith.addf %2, %4 : vector<8x32xf32>
    %cst_5 = arith.constant 0.000000e+00 : f32
    %6 = vector.broadcast %cst_5 : f32 to vector<8x32xf32>
    %7 = arith.maximumf %5, %6 : vector<8x32xf32>
    %c0_6 = arith.constant 0 : index
    %c0_7 = arith.constant 0 : index
    %8 = vector.load %arg4[%c0_6, %c0_7] : memref<32x4xf32, #tpu.memory_space<vmem>>, vector<32x4xf32>
    %cst_8 = arith.constant dense<0.000000e+00> : vector<8x4xf32>
    %9 = tpu.matmul %7, %8, %cst_8 {dimension_numbers = #tpu.dot_dimension_numbers<[1], [0], [0], [1], [0, 0, 1, 1], [], []>} : vector<8x32xf32>, vector<32x4xf32>, vector<8x4xf32> -> vector<8x4xf32>
    %c0_9 = arith.constant 0 : index
    %c0_10 = arith.constant 0 : index
    %10 = vector.load %arg5[%c0_9, %c0_10] : memref<1x4xf32, #tpu.memory_space<vmem>>, vector<1x4xf32>
    %11 = vector.broadcast %10 : vector<1x4xf32> to vector<8x4xf32>
    %12 = arith.addf %9, %11 : vector<8x4xf32>
    %cst_11 = arith.constant dense<0xFF800000> : vector<8xf32>
    %13 = vector.multi_reduction <maximumf>, %12, %cst_11 [1] : vector<8x4xf32> to vector<8xf32>
    %14 = vector.shape_cast %13 : vector<8xf32> to vector<8x1xf32>
    %15 = vector.broadcast %14 : vector<8x1xf32> to vector<8x4xf32>
    %16 = arith.subf %12, %15 : vector<8x4xf32>
    %17 = math.exp %16 : vector<8x4xf32>
    %cst_12 = arith.constant dense<0.000000e+00> : vector<8xf32>
    %18 = vector.multi_reduction <add>, %17, %cst_12 [1] : vector<8x4xf32> to vector<8xf32>
    %19 = vector.shape_cast %18 : vector<8xf32> to vector<8x1xf32>
    %20 = tpu.reciprocal %19 : vector<8x1xf32> -> vector<8x1xf32>
    %21 = vector.broadcast %20 : vector<8x1xf32> to vector<8x4xf32>
    %22 = arith.mulf %17, %21 : vector<8x4xf32>
    %23 = arith.truncf %22 : vector<8x4xf32> to vector<8x4xbf16>
    %c0_13 = arith.constant 0 : index
    %c0_14 = arith.constant 0 : index
    %24 = vector.load %arg6[%c0_13, %c0_14] : memref<8x4xbf16, #tpu.memory_space<vmem>>, vector<8x4xbf16>
    tpu.vector_store %arg6[%c0_13, %c0_14], %23 {strides = array<i32>} : memref<8x4xbf16, #tpu.memory_space<vmem>>, vector<8x4xbf16>,
    return
  }
  func.func @transform_0(%arg0: i32) -> (i32, i32) {
    %c0_i32 = arith.constant 0 : i32
    %c0_i32_0 = arith.constant 0 : i32
    return %arg0, %c0_i32 : i32, i32
  }
  func.func @transform_1(%arg0: i32) -> (i32, i32) {
    %c0_i32 = arith.constant 0 : i32
    %c0_i32_0 = arith.constant 0 : i32
    %c0_i32_1 = arith.constant 0 : i32
    return %c0_i32, %c0_i32_0 : i32, i32
  }
  func.func @transform_2(%arg0: i32) -> (i32, i32) {
    %c0_i32 = arith.constant 0 : i32
    %c0_i32_0 = arith.constant 0 : i32
    %c0_i32_1 = arith.constant 0 : i32
    return %c0_i32, %c0_i32_0 : i32, i32
  }
  func.func @transform_3(%arg0: i32) -> (i32, i32) {
    %c0_i32 = arith.constant 0 : i32
    %c0_i32_0 = arith.constant 0 : i32
    %c0_i32_1 = arith.constant 0 : i32
    return %c0_i32, %c0_i32_0 : i32, i32
  }
  func.func @transform_4(%arg0: i32) -> (i32, i32) {
    %c0_i32 = arith.constant 0 : i32
    %c0_i32_0 = arith.constant 0 : i32
    %c0_i32_1 = arith.constant 0 : i32
    return %c0_i32, %c0_i32_0 : i32, i32
  }
  func.func @transform_5(%arg0: i32) -> (i32, i32) {
    %c0_i32 = arith.constant 0 : i32
    %c0_i32_0 = arith.constant 0 : i32
    return %arg0, %c0_i32 : i32, i32
  }
}

</mosaic_0001>

<bundles_post_ra>
// kernel: tpu_custom_call.1
= control target key start
LH: loop header
LB: loop body
LE: loop exit
PB: predicated region body
PF: predicated region fallthrough
CT: control target
= control target key end

     0   :  { %vm27_vm0 = vcmask 130048   ;;  %vm60_vm1 = vcmask 261120   ;;  %vm84_vm2 = vcmask 31744   ;;  %vm110_vm7 = vcmask 27648   ;;  %s184_s1 = inlined_call_operand.vmem [shape: f32[16,32], index: 1, kind: input, shape index: {}]   ;;  %s185_s0 = inlined_call_operand.vmem [shape: f32[8,16], index: 0, kind: input, shape index: {}]   ;;  %s186_s3 = inlined_call_operand.vmem [shape: f32[32,4], index: 3, kind: input, shape index: {}]   ;;  %s187_s2 = inlined_call_operand.vmem [shape: f32[1,32], index: 2, kind: input, shape index: {}]   ;;  %s188_s4 = inlined_call_operand.vmem [shape: f32[1,4], index: 4, kind: input, shape index: {}]   ;;  %s189_s5 = inlined_call_operand.vmem [shape: bf16[8,4], index: 5, kind: output, shape index: {}]  }
   0x1   :  { %v22_v0 = vld [vmem:[%s184_s1 + $0x8] sm:$0xff]  ;;  %v21_v1 = vld [vmem:[%s184_s1] sm:$0xff]  ;;  %v55_v3 = vld [vmem:[%s186_s3 + $0x18] sm:$0xff] }
   0x2   :  { %45 = vmatpush.msra.mxu0 %v22_v0  ;;  %v20_v2 = vld [vmem:[%s185_s0] sm:$0xff]  ;;  %76 = vmatpush.msra.mxu1 %v55_v3  ;;  %v54_v4 = vld [vmem:[%s186_s3 + $0x10] sm:$0xff]  ;;  %v53_v5 = vld [vmem:[%s186_s3 + $0x8] sm:$0xff] }
   0x3   :  { %v52_v6 = vld [vmem:[%s186_s3] sm:$0xff] }
   0x4   :  { %46 = vmatpush.msra.mxu0 %v21_v1  ;;  %77 = vmatpush.msra.mxu1 %v54_v4  ;;  %v118_v7 = vld [vmem:[%s187_s2] ss:$0 sm:$0xff] }
   0x5   :  { %116 = vmatmul.msk.f32.vlgmr.msra.gmra.mxu0 %vm27_vm0, %v20_v2  ;;  %v119_v11 = vld [vmem:[%s188_s4] ss:$0 sm:$0xff] }
   0x6   :  { %78 = vmatpush.msra.mxu1 %v53_v5 }
   0x8   :  { %79 = vmatpush.msra.mxu1 %v52_v6 }
  0x82   :  { %v48_v8 = vpop.f32.mrf.mxu0 }
  0x83   :  { %v49_v9 = vadd.f32 %v118_v7, %v48_v8 }
  0x85   :  { %v51_v10 = vmax.f32 %v49_v9, 0.0 }
  0x87   :  { %117 = vmatmul.msk.f32.vlgmr.msra.gmra.mxu1 %vm60_vm1, %v51_v10 }
 0x104   :  { %v81_v12 = vpop.f32.mrf.mxu1 }
 0x105   :  { %v82_v13 = vadd.f32 %v119_v11, %v81_v12 }
 0x107   :  { %v85_v14 = vsel %vm84_vm2, %v82_v13, -inf }
 0x108   :  { %86 = vmax.xlane.f32.xlu0 %v85_v14 }
 0x17b   :  { %v87_v15 = vpop.xlane.xlu0 %86 }
 0x17c   :  { %v88_v16 = vsub.f32 %v82_v13, %v87_v15 }
 0x17e   :  { %v89_v17 = vmul.f32 1.442695, %v88_v16 }
 0x180   :  { %120 = vpow2.f32 %v89_v17 }
 0x186   :  { %v121_v18 = vpop.eup %120 }
 0x187   :  { %v91_v19 = vsel %vm84_vm2, %v121_v18, 0.0 }
 0x188   :  { %92 = vadd.xlane.f32.xlu0 %v91_v19 }
 0x1fb   :  { %v93_v20 = vpop.xlane.xlu0 %92 }
 0x1fc   :  { %122 = vrcp.f32 %v93_v20  ;;  %v105_v24 = vand.u32 2147483648, %v93_v20  ;;  %v103_v26 = vand.u32 2147483647, %v93_v20  ;;  %vm99_vm4 = vweird.f32 %v93_v20 }
 0x1fe   :  { %v106_v28 = vor.u32 1.1754944e-38, %v105_v24  ;;  %vm104_vm6 = vcmp.eq.f32.partialorder %v103_v26, 8.507059e+37 }
 0x202   :  { %v123_v21 = vpop.eup %122 }
 0x203   :  { %v95_v22 = vmul.f32 %v123_v21, %v93_v20  ;;  %vm100_vm3 = vweird.f32 %v123_v21 }
 0x204   :  { %vm101_vm5 = vmor %vm99_vm4, %vm100_vm3 }
 0x205   :  { %v96_v23 = vsub.f32 1.0, %v95_v22 }
 0x207   :  { %v97_v25 = vmul.f32 %v123_v21, %v96_v23 }
 0x209   :  { %v98_v27 = vadd.f32 %v123_v21, %v97_v25 }
 0x20b   :  { %v102_v29 = vsel %vm101_vm5, %v123_v21, %v98_v27 }
 0x20c   :  { %v107_v30 = vsel %vm104_vm6, %v106_v28, %v102_v29 }
 0x20d   :  { %v108_v31 = vmul.f32 %v121_v18, %v107_v30 }
 0x20f   :  { %v109_v32 = vpack.c.bf16 %v108_v31, %v108_v31 }
 0x211   :  { %111 = vst.msk [vmem:[%s189_s5] sm:$0xf] %vm110_vm7, %v109_v32 }

</bundles_post_ra>
